<compile_context>
chip_gen: v5e
topology: v5e:2x2
jax: 0.10.0
libtpu: 0.0.40
codegen_flags: <defaults>
</compile_context>

<pallas_src>
import math

import jax
import jax.numpy as jnp
import numpy as np
from jax import lax
from jax.experimental import pallas as pl
from jax.experimental.pallas import tpu as pltpu


def _round_up(x, m):
    return ((x + m - 1) // m) * m


def _pick_chunk(s, max_chunk=16):
    """Largest divisor of s that is <= max_chunk (timesteps per grid step)."""
    for c in range(min(s, max_chunk), 0, -1):
        if s % c == 0:
            return c
    return 1


# --------------------------------------------------------------------------
# Kernel 1/3 and 3/3: parallel matmul + bias (used for x-projection and fc).
# --------------------------------------------------------------------------
def _matmul_bias_kernel(x_ref, w_ref, b_ref, o_ref):
    o_ref[...] = (
        jnp.dot(x_ref[...].astype(w_ref.dtype), w_ref[...],
                preferred_element_type=jnp.float32)
        + b_ref[...]
    ).astype(o_ref.dtype)


def _matmul_bias(x, w, b):
    """x: (M, K) f32, w: (K, N), b: (1, N) f32 -> (M, N) f32, grid over M tiles."""
    M, K = x.shape
    N = w.shape[1]
    tm = min(512, _round_up(M, 8))
    Mp = _round_up(M, tm)
    if Mp != M:
        x = jnp.pad(x, ((0, Mp - M), (0, 0)))

    out = pl.pallas_call(
        _matmul_bias_kernel,
        out_shape=jax.ShapeDtypeStruct((Mp, N), jnp.float32),
        grid_spec=pltpu.PrefetchScalarGridSpec(
            num_scalar_prefetch=0,
            grid=(Mp // tm,),
            in_specs=[
                pl.BlockSpec((tm, K), lambda i: (i, 0)),
                pl.BlockSpec((K, N), lambda i: (0, 0)),
                pl.BlockSpec((1, N), lambda i: (0, 0)),
            ],
            out_specs=pl.BlockSpec((tm, N), lambda i: (i, 0)),
        ),
        compiler_params=pltpu.CompilerParams(
            dimension_semantics=("parallel",)),
    )(x, w, b)
    return out[:M]


# --------------------------------------------------------------------------
# Kernel 2/3: sequential LSTM recurrence, T_chunk timesteps per grid step.
# Only h_prev @ W_hh^T (plus elementwise gate math) is on the serial path.
# --------------------------------------------------------------------------
def _lstm_recurrence_kernel(gx_ref, whh_ref, cell_ref, hn_ref, cn_ref,
                            h_scr, c_scr):
    chunk = pl.program_id(0)
    Hp = h_scr.shape[-1]
    Tc = gx_ref.shape[0]

    @pl.when(chunk == 0)
    def _():
        h_scr[...] = jnp.zeros_like(h_scr)
        c_scr[...] = jnp.zeros_like(c_scr)

    whh = whh_ref[...]                       # (Hp, 4*Hp), loaded once per chunk

    def body(t, carry):
        h_prev = h_scr[...]                  # (Bp, Hp) f32
        c_prev = c_scr[...]                  # (Bp, Hp) f32
        # gates_x (precomputed, includes bias) + recurrent projection
        gates = gx_ref[t] + jnp.dot(h_prev.astype(whh.dtype), whh,
                                    preferred_element_type=jnp.float32)
        # PyTorch gate order i, f, g, o; each gate is a lane-aligned 128-wide block.
        i_g = jax.nn.sigmoid(gates[:, 0 * Hp:1 * Hp])
        f_g = jax.nn.sigmoid(gates[:, 1 * Hp:2 * Hp])
        g_g = jnp.tanh(gates[:, 2 * Hp:3 * Hp])
        o_g = jax.nn.sigmoid(gates[:, 3 * Hp:4 * Hp])
        c_new = f_g * c_prev + i_g * g_g
        h_new = o_g * jnp.tanh(c_new)
        h_scr[...] = h_new
        c_scr[...] = c_new
        cell_ref[t] = h_new                  # lane-dense (Bp, Hp) store
        return carry

    lax.fori_loop(0, Tc, body, 0, unroll=True)

    @pl.when(chunk == pl.num_programs(0) - 1)
    def _():
        hn_ref[...] = h_scr[...]
        cn_ref[...] = c_scr[...]


# --------------------------------------------------------------------------
# Wrapper
# --------------------------------------------------------------------------
def structure_aware_lstm_forward(x, params, *, use_bf16_matmul=False):
    """x: (B, S, D) float. Returns (output.squeeze(), (h_n, c_n))."""
    x = x.astype(jnp.float32)
    B, S, D = x.shape
    H = params["w_hh"].shape[1]
    V = params["w_fc"].shape[0]

    Bp = _round_up(B, 8)        # fill f32 sublane tile
    Hp = _round_up(H, 128)      # per-gate lane-aligned width (also h/c carry width)
    Vp = _round_up(V, 128)      # lane-dense logits
    Gp = 4 * Hp
    Tc = _pick_chunk(S)

    w_dtype = jnp.bfloat16 if use_bf16_matmul else jnp.float32

    # ---- weight prep: per-gate padded, pre-transposed ----
    w_ih = params["w_ih"].astype(jnp.float32)              # (4H, D)
    w_hh = params["w_hh"].astype(jnp.float32)              # (4H, H)
    bias = (params["b_ih"] + params["b_hh"]).astype(jnp.float32)  # (4H,)

    def pad_gate_rows(w):  # (4H, X) gate-major rows -> (X, 4*Hp)
        X = w.shape[1]
        w4 = w.reshape(4, H, X)
        w4 = jnp.pad(w4, ((0, 0), (0, Hp - H), (0, 0)))
        return jnp.transpose(w4, (2, 0, 1)).reshape(X, Gp)

    wih_t = pad_gate_rows(w_ih).astype(w_dtype)                           # (D, Gp)
    whh_t = pad_gate_rows(jnp.pad(w_hh, ((0, 0), (0, Hp - H)))).astype(w_dtype)  # (Hp, Gp)
    b_row = jnp.pad(bias.reshape(4, H), ((0, 0), (0, Hp - H))).reshape(1, Gp)

    wfc_t = jnp.pad(params["w_fc"].astype(jnp.float32).T,
                    ((0, Hp - H), (0, Vp - V))).astype(w_dtype)           # (Hp, Vp)
    bfc_row = jnp.pad(params["b_fc"].astype(jnp.float32).reshape(1, V),
                      ((0, 0), (0, Vp - V)))                              # (1, Vp)

    # ---- input prep: time-major, batch padded ----
    x_tbd = jnp.transpose(x, (1, 0, 2))                                   # (S, B, D)
    x_tbd = jnp.pad(x_tbd, ((0, 0), (0, Bp - B), (0, 0)))                 # (S, Bp, D)

    # ---- stage 1: x projection for all timesteps (parallel, one big matmul) ----
    gates_x = _matmul_bias(x_tbd.reshape(S * Bp, D), wih_t, b_row)        # (S*Bp, Gp)
    gates_x = gates_x.reshape(S, Bp, Gp)

    # ---- stage 2: sequential recurrence, Tc timesteps per grid step ----
    cell_out, h_n, c_n = pl.pallas_call(
        _lstm_recurrence_kernel,
        out_shape=(
            jax.ShapeDtypeStruct((S, Bp, Hp), jnp.float32),
            jax.ShapeDtypeStruct((Bp, Hp), jnp.float32),
            jax.ShapeDtypeStruct((Bp, Hp), jnp.float32),
        ),
        grid_spec=pltpu.PrefetchScalarGridSpec(
            num_scalar_prefetch=0,
            grid=(S // Tc,),
            in_specs=[
                pl.BlockSpec((Tc, Bp, Gp), lambda c: (c, 0, 0)),   # gates_x chunk
                pl.BlockSpec((Hp, Gp), lambda c: (0, 0)),          # W_hh^T (resident)
            ],
            out_specs=[
                pl.BlockSpec((Tc, Bp, Hp), lambda c: (c, 0, 0)),   # cell_out chunk
                pl.BlockSpec((Bp, Hp), lambda c: (0, 0)),          # h_n
                pl.BlockSpec((Bp, Hp), lambda c: (0, 0)),          # c_n
            ],
            scratch_shapes=[
                pltpu.VMEM((Bp, Hp), jnp.float32),                 # h carry
                pltpu.VMEM((Bp, Hp), jnp.float32),                 # c carry
            ],
        ),
        compiler_params=pltpu.CompilerParams(
            dimension_semantics=("arbitrary",)),   # recurrence over time is sequential
    )(gates_x, whh_t)

    # ---- stage 3: fc projection over all timesteps at once (parallel) ----
    logits = _matmul_bias(cell_out.reshape(S * Bp, Hp), wfc_t, bfc_row)   # (S*Bp, Vp)
    logits = logits.reshape(S, Bp, Vp)[:, :B, :V]                         # (S, B, V)

    output = jnp.transpose(logits, (1, 0, 2))                             # (B, S, V)
    h_n = h_n[:B, :H][None]                                               # (1, B, H)
    c_n = c_n[:B, :H][None]
    return jnp.squeeze(output), (h_n, c_n)


# --------------------------------------------------------------------------
# Pure-JAX reference (validation)
# --------------------------------------------------------------------------
def _reference_forward(x, params):
    x = x.astype(jnp.float32)
    B, S, D = x.shape
    H = params["w_hh"].shape[1]
    w_ih, w_hh = params["w_ih"], params["w_hh"]
    b = params["b_ih"] + params["b_hh"]

    def step(carry, x_t):
        h, c = carry
        gates = x_t @ w_ih.T + h @ w_hh.T + b
        i = jax.nn.sigmoid(gates[:, 0 * H:1 * H])
        f = jax.nn.sigmoid(gates[:, 1 * H:2 * H])
        g = jnp.tanh(gates[:, 2 * H:3 * H])
        o = jax.nn.sigmoid(gates[:, 3 * H:4 * H])
        c_new = f * c + i * g
        h_new = o * jnp.tanh(c_new)
        return (h_new, c_new), h_new

    h0 = jnp.zeros((B, H), jnp.float32)
    c0 = jnp.zeros((B, H), jnp.float32)
    (h_n, c_n), hs = jax.lax.scan(step, (h0, c0), jnp.transpose(x, (1, 0, 2)))
    cell_out = jnp.transpose(hs, (1, 0, 2))
    output = cell_out @ params["w_fc"].T + params["b_fc"]
    return jnp.squeeze(output), (h_n[None], c_n[None])


def make_params(key, vocab_size, input_dim, hidden_dim):
    """Deterministic synthetic parameters with PyTorch LSTM/Linear shapes.

    The module's default initializer='zeros' zeroes the LSTM weights (degenerate
    forward); small deterministic random values are used instead so the kernel
    exercises the real compute path.
    """
    ks = jax.random.split(key, 4)
    bound = 1.0 / math.sqrt(hidden_dim)
    return {
        "w_ih": jax.random.uniform(ks[0], (4 * hidden_dim, input_dim),
                                   jnp.float32, -bound, bound),
        "w_hh": jax.random.uniform(ks[1], (4 * hidden_dim, hidden_dim),
                                   jnp.float32, -bound, bound),
        "b_ih": jnp.zeros((4 * hidden_dim,), jnp.float32),
        "b_hh": jnp.zeros((4 * hidden_dim,), jnp.float32),
        "w_fc": jax.random.uniform(ks[2], (vocab_size, hidden_dim),
                                   jnp.float32, -bound, bound),
        "b_fc": jax.random.uniform(ks[3], (vocab_size,),
                                   jnp.float32, -bound, bound),
    }


if __name__ == "__main__":
    B, S, D, H, V = 2, 8, 16, 32, 10

    key = jax.random.PRNGKey(0)
    kx, kp = jax.random.split(key)
    x = jax.random.normal(kx, (B, S, D), jnp.float32)   # (batch, seq, input_dim)
    params = make_params(kp, vocab_size=V, input_dim=D, hidden_dim=H)

    out, (h_n, c_n) = structure_aware_lstm_forward(x, params)
    out = jax.block_until_ready(out)
    h_n = jax.block_until_ready(h_n)
    c_n = jax.block_until_ready(c_n)

    ref_out, (ref_h, ref_c) = _reference_forward(x, params)
    np.testing.assert_allclose(np.asarray(out), np.asarray(ref_out), rtol=1e-4, atol=1e-4)
    np.testing.assert_allclose(np.asarray(h_n), np.asarray(ref_h), rtol=1e-4, atol=1e-4)
    np.testing.assert_allclose(np.asarray(c_n), np.asarray(ref_c), rtol=1e-4, atol=1e-4)

    print("KERNEL_OK")
</pallas_src>

<mosaic_0001>
module attributes {stable_mosaic.version = 11 : i64} {
  func.func @_matmul_bias_kernel(%arg0: i32, %arg1: memref<64x16xf32, #tpu.memory_space<vmem>>, %arg2: memref<16x512xf32, #tpu.memory_space<vmem>>, %arg3: memref<1x512xf32, #tpu.memory_space<vmem>>, %arg4: memref<64x512xf32, #tpu.memory_space<vmem>>) attributes {dimension_semantics = [#tpu.dimension_semantics<parallel>], iteration_bounds = array<i64: 1>, scalar_prefetch = 0 : i64, scratch_operands = 0 : i64, tpu.core_type = #tpu.core_type<tc>, window_params = [{transform_indices = @transform_0, window_bounds = array<i64: 64, 16>}, {pipeline_mode = #tpu.pipeline_mode<synchronous>, transform_indices = @transform_1, window_bounds = array<i64: 16, 512>}, {pipeline_mode = #tpu.pipeline_mode<synchronous>, transform_indices = @transform_2, window_bounds = array<i64: 1, 512>}, {transform_indices = @transform_3, window_bounds = array<i64: 64, 512>}]} {
    %c0 = arith.constant 0 : index
    %c0_0 = arith.constant 0 : index
    %0 = vector.load %arg1[%c0, %c0_0] : memref<64x16xf32, #tpu.memory_space<vmem>>, vector<64x16xf32>
    %c0_1 = arith.constant 0 : index
    %c0_2 = arith.constant 0 : index
    %1 = vector.load %arg2[%c0_1, %c0_2] : memref<16x512xf32, #tpu.memory_space<vmem>>, vector<16x512xf32>
    %cst = arith.constant dense<0.000000e+00> : vector<64x512xf32>
    %2 = tpu.matmul %0, %1, %cst {dimension_numbers = #tpu.dot_dimension_numbers<[1], [0], [0], [1], [0, 0, 1, 1], [], []>} : vector<64x16xf32>, vector<16x512xf32>, vector<64x512xf32> -> vector<64x512xf32>
    %c0_3 = arith.constant 0 : index
    %c0_4 = arith.constant 0 : index
    %3 = vector.load %arg3[%c0_3, %c0_4] : memref<1x512xf32, #tpu.memory_space<vmem>>, vector<1x512xf32>
    %4 = vector.broadcast %3 : vector<1x512xf32> to vector<64x512xf32>
    %5 = arith.addf %2, %4 : vector<64x512xf32>
    %c0_5 = arith.constant 0 : index
    %c0_6 = arith.constant 0 : index
    %6 = vector.load %arg4[%c0_5, %c0_6] : memref<64x512xf32, #tpu.memory_space<vmem>>, vector<64x512xf32>
    tpu.vector_store %arg4[%c0_5, %c0_6], %5 {strides = array<i32>} : memref<64x512xf32, #tpu.memory_space<vmem>>, vector<64x512xf32>,
    return
  }
  func.func @transform_0(%arg0: i32) -> (i32, i32) {
    %c0_i32 = arith.constant 0 : i32
    %c0_i32_0 = arith.constant 0 : i32
    return %arg0, %c0_i32 : i32, i32
  }
  func.func @transform_1(%arg0: i32) -> (i32, i32) {
    %c0_i32 = arith.constant 0 : i32
    %c0_i32_0 = arith.constant 0 : i32
    %c0_i32_1 = arith.constant 0 : i32
    return %c0_i32, %c0_i32_0 : i32, i32
  }
  func.func @transform_2(%arg0: i32) -> (i32, i32) {
    %c0_i32 = arith.constant 0 : i32
    %c0_i32_0 = arith.constant 0 : i32
    %c0_i32_1 = arith.constant 0 : i32
    return %c0_i32, %c0_i32_0 : i32, i32
  }
  func.func @transform_3(%arg0: i32) -> (i32, i32) {
    %c0_i32 = arith.constant 0 : i32
    %c0_i32_0 = arith.constant 0 : i32
    return %arg0, %c0_i32 : i32, i32
  }
}

</mosaic_0001>

<bundles_post_ra>
// kernel: tpu_custom_call.1
= control target key start
LH: loop header
LB: loop body
LE: loop exit
PB: predicated region body
PF: predicated region fallthrough
CT: control target
= control target key end

     0   :  { %vm41_vm0 = vcmask 130048   ;;  %s490_s0 = inlined_call_operand.vmem [shape: f32[64,16], index: 0, kind: input, shape index: {}]   ;;  %s491_s1 = inlined_call_operand.vmem [shape: f32[16,512], index: 1, kind: input, shape index: {}]   ;;  %s492_s2 = inlined_call_operand.vmem [shape: f32[1,512], index: 2, kind: input, shape index: {}]   ;;  %s493_s3 = inlined_call_operand.hbm [shape: f32[64,512], index: 3, kind: output, shape index: {}]  }
   0x1   :  { %v29_v0 = vld [vmem:[%s491_s1 + $0x30] sm:$0xff]  ;;  %v30_v1 = vld [vmem:[%s491_s1 + $0x38] sm:$0xff]  ;;  %v15_v4 = vld [vmem:[%s490_s0] sm:$0xff] }
   0x2   :  { %v25_v2 = vld [vmem:[%s491_s1 + $0x10] sm:$0xff]  ;;  %162 = vmatpush.msra.mxu2 %v29_v0  ;;  %203 = vmatpush.msra.mxu3 %v30_v1  ;;  %v26_v3 = vld [vmem:[%s491_s1 + $0x18] sm:$0xff]  ;;  %v27_v5 = vld [vmem:[%s491_s1 + $0x20] sm:$0xff] }
   0x3   :  { %80 = vmatpush.msra.mxu0 %v27_v5  ;;  %v28_v6 = vld [vmem:[%s491_s1 + $0x28] sm:$0xff]  ;;  %v23_v7 = vld [vmem:[%s491_s1] sm:$0xff] }
   0x4   :  { %163 = vmatpush.msra.mxu2 %v25_v2  ;;  %204 = vmatpush.msra.mxu3 %v26_v3  ;;  %v24_v8 = vld [vmem:[%s491_s1 + $0x8] sm:$0xff] }
   0x5   :  { %296 = vmatmul.msk.f32.vlgmr.msra.gmra.mxu2 %vm41_vm0, %v15_v4  ;;  %304 = vmatmul.msk.f32.vlgmr.msra.gmra.mxu3 %vm41_vm0, %v15_v4 }
   0x6   :  { %8 = vsyncpa [#allocation3], 0  ;;  %121 = vmatpush.msra.mxu1 %v28_v6  ;;  %81 = vmatpush.msra.mxu0 %v23_v7  ;;  %v16_v9 = vld [vmem:[%s490_s0 + $0x8] sm:$0xff]  ;;  %v17_v10 = vld [vmem:[%s490_s0 + $0x10] sm:$0xff]  ;;  %s268_s20 = sshll.u32 %s493_s3, 4  ;;  %s342_s21 = smov 512   ;;  %s269_s20 = int_to_ptr.hbm [resolvable:$true] %s268_s20 }
   0x7   :  { %280 = vmatmul.msk.f32.vlgmr.msra.gmra.mxu0 %vm41_vm0, %v15_v4  ;;  %v18_v11 = vld [vmem:[%s490_s0 + $0x18] sm:$0xff]  ;;  %v19_v12 = vld [vmem:[%s490_s0 + $0x20] sm:$0xff]  ;;  %v20_v13 = vld [vmem:[%s490_s0 + $0x28] sm:$0xff]  ;;  %s343_s22 = smov 32  }
   0x8   :  { %122 = vmatpush.msra.mxu1 %v24_v8  ;;  %v21_v14 = vld [vmem:[%s490_s0 + $0x30] sm:$0xff]  ;;  %v22_v15 = vld [vmem:[%s490_s0 + $0x38] sm:$0xff]  ;;  %v31_v16 = vld [vmem:[%s492_s2] sm:$0xf]  ;;  %s341_s0 = smov [#allocation2]  }
   0x9   :  { %288 = vmatmul.msk.f32.vlgmr.msra.gmra.mxu1 %vm41_vm0, %v15_v4  ;;  %v447_v17 = vperm.slane %v31_v16, 0  ;;  %v449_v18 = vperm.slane %v31_v16, 1  ;;  %v452_v21 = vperm.slane %v31_v16, 2  ;;  %v454_v22 = vperm.slane %v31_v16, 3  ;;  %s266_s2 = sshll.u32 %s341_s0, 4  ;;  %s267_s2 = int_to_ptr.vmem [resolvable:$true] %s266_s2 }
   0xd   :  { %297 = vmatmul.msk.f32.gmra.mxu2 %vm41_vm0, %v16_v9  ;;  %305 = vmatmul.msk.f32.gmra.mxu3 %vm41_vm0, %v16_v9 }
   0xf   :  { %281 = vmatmul.msk.f32.gmra.mxu0 %vm41_vm0, %v16_v9 }
  0x11   :  { %289 = vmatmul.msk.f32.gmra.mxu1 %vm41_vm0, %v16_v9 }
  0x15   :  { %298 = vmatmul.msk.f32.gmra.mxu2 %vm41_vm0, %v17_v10  ;;  %306 = vmatmul.msk.f32.gmra.mxu3 %vm41_vm0, %v17_v10 }
  0x17   :  { %282 = vmatmul.msk.f32.gmra.mxu0 %vm41_vm0, %v17_v10 }
  0x19   :  { %290 = vmatmul.msk.f32.gmra.mxu1 %vm41_vm0, %v17_v10 }
  0x1d   :  { %299 = vmatmul.msk.f32.gmra.mxu2 %vm41_vm0, %v18_v11  ;;  %307 = vmatmul.msk.f32.gmra.mxu3 %vm41_vm0, %v18_v11 }
  0x1f   :  { %283 = vmatmul.msk.f32.gmra.mxu0 %vm41_vm0, %v18_v11 }
  0x21   :  { %291 = vmatmul.msk.f32.gmra.mxu1 %vm41_vm0, %v18_v11 }
  0x25   :  { %300 = vmatmul.msk.f32.gmra.mxu2 %vm41_vm0, %v19_v12  ;;  %308 = vmatmul.msk.f32.gmra.mxu3 %vm41_vm0, %v19_v12 }
  0x27   :  { %284 = vmatmul.msk.f32.gmra.mxu0 %vm41_vm0, %v19_v12 }
  0x29   :  { %292 = vmatmul.msk.f32.gmra.mxu1 %vm41_vm0, %v19_v12 }
  0x2d   :  { %301 = vmatmul.msk.f32.gmra.mxu2 %vm41_vm0, %v20_v13  ;;  %309 = vmatmul.msk.f32.gmra.mxu3 %vm41_vm0, %v20_v13 }
  0x2f   :  { %285 = vmatmul.msk.f32.gmra.mxu0 %vm41_vm0, %v20_v13 }
  0x31   :  { %293 = vmatmul.msk.f32.gmra.mxu1 %vm41_vm0, %v20_v13 }
  0x35   :  { %302 = vmatmul.msk.f32.gmra.mxu2 %vm41_vm0, %v21_v14  ;;  %310 = vmatmul.msk.f32.gmra.mxu3 %vm41_vm0, %v21_v14 }
  0x37   :  { %286 = vmatmul.msk.f32.gmra.mxu0 %vm41_vm0, %v21_v14 }
  0x39   :  { %294 = vmatmul.msk.f32.gmra.mxu1 %vm41_vm0, %v21_v14 }
  0x3d   :  { %303 = vmatmul.msk.f32.gmra.mxu2 %vm41_vm0, %v22_v15  ;;  %311 = vmatmul.msk.f32.gmra.mxu3 %vm41_vm0, %v22_v15 }
  0x3f   :  { %287 = vmatmul.msk.f32.gmra.mxu0 %vm41_vm0, %v22_v15 }
  0x41   :  { %295 = vmatmul.msk.f32.gmra.mxu1 %vm41_vm0, %v22_v15 }
  0x84   :  { %v83_v19 = vpop.f32.mrf.mxu0 }
  0x85   :  { %v84_v20 = vadd.f32 %v83_v19, %v447_v17 }
  0x86   :  { %v124_v23 = vpop.f32.mrf.mxu1 }
  0x87   :  { %230 = vst [vmem:[#allocation2] sm:$0xff] %v84_v20  ;;  %v125_v24 = vadd.f32 %v124_v23, %v449_v18 }
  0x88   :  { %v165_v25 = vpop.f32.mrf.mxu2  ;;  %v206_v26 = vpop.f32.mrf.mxu3 }
  0x89   :  { %231 = vst [vmem:[#allocation2 + $0x8] sm:$0xff] %v125_v24  ;;  %v166_v27 = vadd.f32 %v165_v25, %v452_v21  ;;  %v207_v28 = vadd.f32 %v206_v26, %v454_v22 }
  0x8b   :  { %232 = vst [vmem:[#allocation2 + $0x10] sm:$0xff] %v166_v27 }
  0x8c   :  { %233 = vst [vmem:[#allocation2 + $0x18] sm:$0xff] %v207_v28  ;;  %v86_v29 = vpop.f32.mrf.mxu0 }
  0x8d   :  { %v87_v30 = vadd.f32 %v86_v29, %v447_v17 }
  0x8e   :  { %v127_v31 = vpop.f32.mrf.mxu1 }
  0x8f   :  { %234 = vst [vmem:[#allocation2 + $0x20] sm:$0xff] %v87_v30  ;;  %v128_v32 = vadd.f32 %v127_v31, %v449_v18 }
  0x90   :  { %v168_v33 = vpop.f32.mrf.mxu2  ;;  %v209_v34 = vpop.f32.mrf.mxu3 }
  0x91   :  { %235 = vst [vmem:[#allocation2 + $0x28] sm:$0xff] %v128_v32  ;;  %v169_v35 = vadd.f32 %v168_v33, %v452_v21  ;;  %v210_v36 = vadd.f32 %v209_v34, %v454_v22 }
  0x93   :  { %236 = vst [vmem:[#allocation2 + $0x30] sm:$0xff] %v169_v35 }
  0x94   :  { %237 = vst [vmem:[#allocation2 + $0x38] sm:$0xff] %v210_v36  ;;  %v89_v37 = vpop.f32.mrf.mxu0 }
  0x95   :  { %v90_v38 = vadd.f32 %v89_v37, %v447_v17 }
  0x96   :  { %v130_v39 = vpop.f32.mrf.mxu1 }
  0x97   :  { %238 = vst [vmem:[#allocation2 + $0x40] sm:$0xff] %v90_v38  ;;  %v131_v40 = vadd.f32 %v130_v39, %v449_v18 }
  0x98   :  { %v171_v41 = vpop.f32.mrf.mxu2  ;;  %v212_v42 = vpop.f32.mrf.mxu3 }
  0x99   :  { %239 = vst [vmem:[#allocation2 + $0x48] sm:$0xff] %v131_v40  ;;  %v172_v43 = vadd.f32 %v171_v41, %v452_v21  ;;  %v213_v44 = vadd.f32 %v212_v42, %v454_v22 }
  0x9b   :  { %240 = vst [vmem:[#allocation2 + $0x50] sm:$0xff] %v172_v43 }
  0x9c   :  { %241 = vst [vmem:[#allocation2 + $0x58] sm:$0xff] %v213_v44  ;;  %v92_v45 = vpop.f32.mrf.mxu0 }
  0x9d   :  { %v93_v46 = vadd.f32 %v92_v45, %v447_v17 }
  0x9e   :  { %v133_v47 = vpop.f32.mrf.mxu1 }
  0x9f   :  { %242 = vst [vmem:[#allocation2 + $0x60] sm:$0xff] %v93_v46  ;;  %v134_v48 = vadd.f32 %v133_v47, %v449_v18 }
  0xa0   :  { %v174_v49 = vpop.f32.mrf.mxu2  ;;  %v215_v50 = vpop.f32.mrf.mxu3 }
  0xa1   :  { %243 = vst [vmem:[#allocation2 + $0x68] sm:$0xff] %v134_v48  ;;  %v175_v51 = vadd.f32 %v174_v49, %v452_v21  ;;  %v216_v52 = vadd.f32 %v215_v50, %v454_v22 }
  0xa3   :  { %244 = vst [vmem:[#allocation2 + $0x70] sm:$0xff] %v175_v51 }
  0xa4   :  { %245 = vst [vmem:[#allocation2 + $0x78] sm:$0xff] %v216_v52  ;;  %v95_v53 = vpop.f32.mrf.mxu0 }
  0xa5   :  { %v96_v54 = vadd.f32 %v95_v53, %v447_v17 }
  0xa6   :  { %v136_v55 = vpop.f32.mrf.mxu1 }
  0xa7   :  { %246 = vst [vmem:[#allocation2 + $0x80] sm:$0xff] %v96_v54  ;;  %v137_v56 = vadd.f32 %v136_v55, %v449_v18 }
  0xa8   :  { %v177_v57 = vpop.f32.mrf.mxu2  ;;  %v218_v58 = vpop.f32.mrf.mxu3 }
  0xa9   :  { %247 = vst [vmem:[#allocation2 + $0x88] sm:$0xff] %v137_v56  ;;  %v178_v59 = vadd.f32 %v177_v57, %v452_v21  ;;  %v219_v60 = vadd.f32 %v218_v58, %v454_v22 }
  0xab   :  { %248 = vst [vmem:[#allocation2 + $0x90] sm:$0xff] %v178_v59 }
  0xac   :  { %249 = vst [vmem:[#allocation2 + $0x98] sm:$0xff] %v219_v60  ;;  %v98_v61 = vpop.f32.mrf.mxu0 }
  0xad   :  { %v99_v62 = vadd.f32 %v98_v61, %v447_v17 }
  0xae   :  { %v139_v63 = vpop.f32.mrf.mxu1 }
  0xaf   :  { %250 = vst [vmem:[#allocation2 + $0xa0] sm:$0xff] %v99_v62  ;;  %v140_v0 = vadd.f32 %v139_v63, %v449_v18 }
  0xb0   :  { %v180_v1 = vpop.f32.mrf.mxu2  ;;  %v221_v2 = vpop.f32.mrf.mxu3 }
  0xb1   :  { %251 = vst [vmem:[#allocation2 + $0xa8] sm:$0xff] %v140_v0  ;;  %v181_v3 = vadd.f32 %v180_v1, %v452_v21  ;;  %v222_v4 = vadd.f32 %v221_v2, %v454_v22 }
  0xb3   :  { %252 = vst [vmem:[#allocation2 + $0xb0] sm:$0xff] %v181_v3 }
  0xb4   :  { %253 = vst [vmem:[#allocation2 + $0xb8] sm:$0xff] %v222_v4  ;;  %v101_v5 = vpop.f32.mrf.mxu0 }
  0xb5   :  { %v102_v6 = vadd.f32 %v101_v5, %v447_v17 }
  0xb6   :  { %v142_v7 = vpop.f32.mrf.mxu1 }
  0xb7   :  { %254 = vst [vmem:[#allocation2 + $0xc0] sm:$0xff] %v102_v6  ;;  %v143_v8 = vadd.f32 %v142_v7, %v449_v18 }
  0xb8   :  { %v183_v9 = vpop.f32.mrf.mxu2  ;;  %v224_v10 = vpop.f32.mrf.mxu3 }
  0xb9   :  { %255 = vst [vmem:[#allocation2 + $0xc8] sm:$0xff] %v143_v8  ;;  %v184_v11 = vadd.f32 %v183_v9, %v452_v21  ;;  %v225_v12 = vadd.f32 %v224_v10, %v454_v22 }
  0xbb   :  { %256 = vst [vmem:[#allocation2 + $0xd0] sm:$0xff] %v184_v11 }
  0xbc   :  { %257 = vst [vmem:[#allocation2 + $0xd8] sm:$0xff] %v225_v12  ;;  %v104_v13 = vpop.f32.mrf.mxu0 }
  0xbd   :  { %v105_v14 = vadd.f32 %v104_v13, %v447_v17 }
  0xbe   :  { %v145_v15 = vpop.f32.mrf.mxu1 }
  0xbf   :  { %258 = vst [vmem:[#allocation2 + $0xe0] sm:$0xff] %v105_v14  ;;  %v146_v16 = vadd.f32 %v145_v15, %v449_v18 }
  0xc0   :  { %v186_v19 = vpop.f32.mrf.mxu2  ;;  %v227_v20 = vpop.f32.mrf.mxu3 }
  0xc1   :  { %259 = vst [vmem:[#allocation2 + $0xe8] sm:$0xff] %v146_v16  ;;  %v187_v23 = vadd.f32 %v186_v19, %v452_v21  ;;  %v228_v24 = vadd.f32 %v227_v20, %v454_v22 }
  0xc3   :  { %260 = vst [vmem:[#allocation2 + $0xf0] sm:$0xff] %v187_v23 }
  0xc4   :  { %261 = vst [vmem:[#allocation2 + $0xf8] sm:$0xff] %v228_v24 }
  0xc5   :  { %274 = dma.vmem_to_hbm [thread:$0]  %s267_s2, 4096, %s269_s20, [#allocation3], %s342_s21, %s342_s21, %s343_s22  }
  0xc6   :  { %339 = dma.done.wait [#allocation3], 4096  }
  0xc7   :  { %340 = vsyncadd [#allocation3], 4294963200 }
  0xc8   :  { %279 = vsyncpa [#allocation3], 1 }

</bundles_post_ra>
